<compile_context>
chip_gen: v7x
topology: tpu7x:2x2x1
jax: 0.10.0
libtpu: 0.0.40
codegen_flags: <defaults>
</compile_context>

<pallas_src>
import functools

import jax
import jax.numpy as jnp
from jax.experimental import pallas as pl
from jax.experimental.pallas import tpu as pltpu


def convex_stocknet_kernel(ut_ref, xt_ref, o_ref):
    ut = ut_ref[...]                                   # (R, F)
    xt = xt_ref[...]                                   # (F, TB)

    # h^T = (x @ U)^T = U^T @ x^T  on the MXU, f32 accumulation.
    ht = jnp.dot(ut, xt, preferred_element_type=jnp.float32)   # (R, TB)
    ht = jnp.maximum(ht, 0.0)                                  # ReLU in f32 (VPU)

    # y^T = ones(1, R) @ relu(h^T): column-sum over regions done on the MXU,
    # producing a lane-dense (1, TB) output row instead of a (TB, 1) column.
    ones_row = jnp.ones((1, ht.shape[0]), dtype=jnp.float32)
    o_ref[...] = jnp.dot(ones_row, ht, preferred_element_type=jnp.float32)


def _round_up(a, m):
    return (a + m - 1) // m * m


@functools.partial(jax.jit, static_argnames=("block_b", "use_bf16_matmul"))
def convex_stocknet_forward(x, U, *, block_b=512, use_bf16_matmul=False):
    """y = relu(x @ (U/||U||)) @ ||U||  ==  sum(relu(x @ U), axis=-1).

    x: (B, F) float32, U: (F, R) float32. Returns (B,) float32.
    """
    B, F = x.shape
    F2, R = U.shape
    assert F == F2

    # Batch tile: multiple of 128 for lane density / MXU row occupancy.
    tb = block_b if B >= block_b else _round_up(B, 128)
    b_pad = _round_up(B, tb)

    # Layout plumbing in the wrapper (cheap XLA transposes), so the kernel's
    # output slab is lane-dense and no in-kernel transpose is needed.
    xt = x.T                                            # (F, B)
    if b_pad != B:
        xt = jnp.pad(xt, ((0, 0), (0, b_pad - B)))      # padded cols -> y=0, sliced off
    ut = U.T                                            # (R, F)

    if use_bf16_matmul:
        # v6e/v7x: bf16 MXU operands; accumulation / ReLU / reduce stay f32.
        xt = xt.astype(jnp.bfloat16)
        ut = ut.astype(jnp.bfloat16)

    grid = (b_pad // tb,)
    out = pl.pallas_call(
        convex_stocknet_kernel,
        out_shape=jax.ShapeDtypeStruct((1, b_pad), jnp.float32),
        grid=grid,
        in_specs=[
            pl.BlockSpec((R, F), lambda i: (0, 0)),     # U^T: resident every step
            pl.BlockSpec((F, tb), lambda i: (0, i)),    # batch tile of x^T
        ],
        out_specs=pl.BlockSpec((1, tb), lambda i: (0, i)),
        compiler_params=pltpu.CompilerParams(
            dimension_semantics=("parallel",),          # shard batch tiles across TCs (v7x)
        ),
    )(ut, xt)
    return out[0, :B]


def _reference(x, U):
    # Literal torch-forward semantics (with the explicit W2 normalization).
    w2 = jnp.linalg.norm(U, axis=0)
    w1 = U / w2
    return jnp.maximum(x @ w1, 0.0) @ w2


if __name__ == "__main__":
    n_features = 16
    n_regions = 128
    n_outputs = 1   # unused in forward (as in the torch module)

    key = jax.random.PRNGKey(0)
    k_u, k_v, k_s, k_x1, k_x2 = jax.random.split(key, 5)

    # Parameters (shapes from __init__). U is random so column norms are > 0
    # (the module's zero-init would make the torch forward NaN everywhere).
    U = jax.random.normal(k_u, (n_features, n_regions), dtype=jnp.float32)
    V = jax.random.normal(k_v, (n_features, n_regions), dtype=jnp.float32)  # unused in forward
    S = jax.random.normal(k_s, (n_features, n_regions), dtype=jnp.float32)  # unused in forward

    # Small batch (single tile, grid=(1,)).
    x_small = jax.random.normal(k_x1, (8, n_features), dtype=jnp.float32)
    y_small = jax.block_until_ready(convex_stocknet_forward(x_small, U))
    assert y_small.shape == (8,)
    assert jnp.allclose(y_small, _reference(x_small, U), rtol=1e-5, atol=1e-4)

    # Ragged batch with explicit small tile to exercise padding + parallel grid.
    x_big = jax.random.normal(k_x2, (300, n_features), dtype=jnp.float32)
    y_big = jax.block_until_ready(convex_stocknet_forward(x_big, U, block_b=128))
    assert y_big.shape == (300,)
    assert jnp.allclose(y_big, _reference(x_big, U), rtol=1e-5, atol=1e-4)

    print("KERNEL_OK")
</pallas_src>

<mosaic_0001>
module attributes {stable_mosaic.version = 11 : i64} {
  func.func @convex_stocknet_kernel(%arg0: i32, %arg1: memref<128x16xf32, #tpu.memory_space<vmem>>, %arg2: memref<16x128xf32, #tpu.memory_space<vmem>>, %arg3: memref<1x128xf32, #tpu.memory_space<vmem>>) attributes {dimension_semantics = [#tpu.dimension_semantics<parallel>], iteration_bounds = array<i64: 1>, scalar_prefetch = 0 : i64, scratch_operands = 0 : i64, tpu.core_type = #tpu.core_type<tc>, window_params = [{pipeline_mode = #tpu.pipeline_mode<synchronous>, transform_indices = @transform_0, window_bounds = array<i64: 128, 16>}, {transform_indices = @transform_1, window_bounds = array<i64: 16, 128>}, {transform_indices = @transform_2, window_bounds = array<i64: 1, 128>}]} {
    %c0 = arith.constant 0 : index
    %c0_0 = arith.constant 0 : index
    %0 = vector.load %arg1[%c0, %c0_0] : memref<128x16xf32, #tpu.memory_space<vmem>>, vector<128x16xf32>
    %c0_1 = arith.constant 0 : index
    %c0_2 = arith.constant 0 : index
    %1 = vector.load %arg2[%c0_1, %c0_2] : memref<16x128xf32, #tpu.memory_space<vmem>>, vector<16x128xf32>
    %cst = arith.constant dense<0.000000e+00> : vector<128x128xf32>
    %2 = tpu.matmul %0, %1, %cst {dimension_numbers = #tpu.dot_dimension_numbers<[1], [0], [0], [1], [0, 0, 1, 1], [], []>} : vector<128x16xf32>, vector<16x128xf32>, vector<128x128xf32> -> vector<128x128xf32>
    %cst_3 = arith.constant 0.000000e+00 : f32
    %3 = vector.broadcast %cst_3 : f32 to vector<128x128xf32>
    %4 = arith.maximumf %2, %3 : vector<128x128xf32>
    %cst_4 = arith.constant 1.000000e+00 : f32
    %5 = vector.broadcast %cst_4 : f32 to vector<1x128xf32>
    %cst_5 = arith.constant dense<0.000000e+00> : vector<1x128xf32>
    %6 = tpu.matmul %5, %4, %cst_5 {dimension_numbers = #tpu.dot_dimension_numbers<[1], [0], [0], [1], [0, 0, 1, 1], [], []>} : vector<1x128xf32>, vector<128x128xf32>, vector<1x128xf32> -> vector<1x128xf32>
    %c0_6 = arith.constant 0 : index
    %c0_7 = arith.constant 0 : index
    %7 = vector.load %arg3[%c0_6, %c0_7] : memref<1x128xf32, #tpu.memory_space<vmem>>, vector<1x128xf32>
    tpu.vector_store %arg3[%c0_6, %c0_7], %6 {strides = array<i32>} : memref<1x128xf32, #tpu.memory_space<vmem>>, vector<1x128xf32>,
    return
  }
  func.func @transform_0(%arg0: i32) -> (i32, i32) {
    %c0_i32 = arith.constant 0 : i32
    %c0_i32_0 = arith.constant 0 : i32
    %c0_i32_1 = arith.constant 0 : i32
    return %c0_i32, %c0_i32_0 : i32, i32
  }
  func.func @transform_1(%arg0: i32) -> (i32, i32) {
    %c0_i32 = arith.constant 0 : i32
    %c0_i32_0 = arith.constant 0 : i32
    return %c0_i32, %arg0 : i32, i32
  }
  func.func @transform_2(%arg0: i32) -> (i32, i32) {
    %c0_i32 = arith.constant 0 : i32
    %c0_i32_0 = arith.constant 0 : i32
    return %c0_i32, %arg0 : i32, i32
  }
}

</mosaic_0001>

<bundles_post_ra>
// kernel: convex_stocknet_forward.1
= control target key start
LH: loop header
LB: loop body
LE: loop exit
PB: predicated region body
PF: predicated region fallthrough
CT: control target
= control target key end

     0   :  { %vm29_vm0 = vcmask 130048   ;;  %v460_v19 = vmov 0.0|0.0   ;;  %vm461_vm1 = vmmov 0   ;;  %v462_v20 = vmov 0.0   ;;  %s552_s1 = inlined_call_operand.vmem [shape: f32[16,128], index: 1, kind: input, shape index: {}]   ;;  %s553_s0 = inlined_call_operand.vmem [shape: f32[128,16], index: 0, kind: input, shape index: {}]   ;;  %s554_s2 = inlined_call_operand.vmem [shape: f32[1,128], index: 2, kind: output, shape index: {}]  }
   0x1   :  { %v27_v0 = vld [vmem:[%s552_s1] sm:$0xff]  ;;  %v28_v1 = vld [vmem:[%s552_s1 + $0x8] sm:$0xff]  ;;  %v13_v5 = vld [vmem:[%s553_s0 + $0x10] sm:$0xff]  ;;  %432 = vmatprep.subr.bf16.mxu1 %v460_v19  ;;  %425 = vmatprep.mubr.msk.f32.mxu1 %vm461_vm1, %v462_v20  ;;  %v463_v61 = vmov 1.0  }
   0x2   :  { %v11_v2 = vld [vmem:[%s553_s0] sm:$0xff]  ;;  %v428_v3 = vpack.c.bf16 %v28_v1, %v27_v0  ;;  %v12_v4 = vld [vmem:[%s553_s0 + $0x8] sm:$0xff]  ;;  %v14_v6 = vld [vmem:[%s553_s0 + $0x18] sm:$0xff] }
   0x3   :  { %369 = vmatprep.mubr.msk.f32.mxu0 %vm29_vm0, %v11_v2  ;;  %v15_v7 = vld [vmem:[%s553_s0 + $0x20] sm:$0xff]  ;;  %v16_v8 = vld [vmem:[%s553_s0 + $0x28] sm:$0xff]  ;;  %v17_v9 = vld [vmem:[%s553_s0 + $0x30] sm:$0xff] }
   0x4   :  { %429 = vmatprep.subr.bf16.mxu0 %v428_v3  ;;  %v18_v10 = vld [vmem:[%s553_s0 + $0x38] sm:$0xff]  ;;  %v19_v11 = vld [vmem:[%s553_s0 + $0x40] sm:$0xff]  ;;  %v20_v12 = vld [vmem:[%s553_s0 + $0x48] sm:$0xff] }
   0x5   :  { %431 = vmatpush3.bf16.msra.mxu0 %v428_v3  ;;  %v21_v13 = vld [vmem:[%s553_s0 + $0x50] sm:$0xff]  ;;  %v22_v14 = vld [vmem:[%s553_s0 + $0x58] sm:$0xff]  ;;  %v23_v15 = vld [vmem:[%s553_s0 + $0x60] sm:$0xff] }
   0x6   :  { %v24_v16 = vld [vmem:[%s553_s0 + $0x68] sm:$0xff]  ;;  %v25_v17 = vld [vmem:[%s553_s0 + $0x70] sm:$0xff]  ;;  %v26_v18 = vld [vmem:[%s553_s0 + $0x78] sm:$0xff] }
   0x8   :  { %370 = vmatmul.mubr.msk.f32.vlgmr.msra.gmra.mrb[0].mxu0 %vm29_vm0, %v12_v4 }
   0x9   :  { %372 = vmatprep.mubr.msk.f32.mxu0 %vm29_vm0, %v13_v5 }
   0xc   :  { %373 = vmatmul.mubr.msk.f32.gmra.mrb[2].mxu0 %vm29_vm0, %v14_v6 }
   0xd   :  { %375 = vmatprep.mubr.msk.f32.mxu0 %vm29_vm0, %v15_v7 }
  0x10   :  { %376 = vmatmul.mubr.msk.f32.gmra.mrb[4].mxu0 %vm29_vm0, %v16_v8 }
  0x11   :  { %378 = vmatprep.mubr.msk.f32.mxu0 %vm29_vm0, %v17_v9 }
  0x14   :  { %379 = vmatmul.mubr.msk.f32.gmra.mrb[6].mxu0 %vm29_vm0, %v18_v10 }
  0x15   :  { %381 = vmatprep.mubr.msk.f32.mxu0 %vm29_vm0, %v19_v11 }
  0x18   :  { %382 = vmatmul.mubr.msk.f32.gmra.mrb[8].mxu0 %vm29_vm0, %v20_v12 }
  0x19   :  { %384 = vmatprep.mubr.msk.f32.mxu0 %vm29_vm0, %v21_v13 }
  0x1c   :  { %385 = vmatmul.mubr.msk.f32.gmra.mrb[10].mxu0 %vm29_vm0, %v22_v14 }
  0x1d   :  { %387 = vmatprep.mubr.msk.f32.mxu0 %vm29_vm0, %v23_v15 }
  0x20   :  { %388 = vmatmul.mubr.msk.f32.gmra.mrb[12].mxu0 %vm29_vm0, %v24_v16 }
  0x21   :  { %390 = vmatprep.mubr.msk.f32.mxu0 %vm29_vm0, %v25_v17 }
  0x24   :  { %391 = vmatmul.mubr.msk.f32.gmra.mrb[14].mxu0 %vm29_vm0, %v26_v18 }
  0xdb   :  { %v371_v21 = vpop.f32.mrb[0].mxu0 }
  0xdc   :  { %v224_v22 = vmax.f32 %v371_v21, 0.0  ;;  %v144_v23 = vpop.f32.mrb[1].mxu0 }
  0xdd   :  { %v223_v24 = vmax.f32 %v144_v23, 0.0 }
  0xdf   :  { %v374_v25 = vpop.f32.mrb[2].mxu0  ;;  %v433_v26 = vpack.c.bf16 %v224_v22, %v223_v24 }
  0xe0   :  { %v226_v27 = vmax.f32 %v374_v25, 0.0  ;;  %v154_v28 = vpop.f32.mrb[3].mxu0 }
  0xe1   :  { %v225_v29 = vmax.f32 %v154_v28, 0.0  ;;  %434 = vmatpush3.bf16.msra.mxu1 %v433_v26 }
  0xe2   :  { %435 = vmatprep.subr.bf16.mxu1 %v460_v19 }
  0xe3   :  { %v436_v30 = vpack.c.bf16 %v226_v27, %v225_v29  ;;  %v377_v31 = vpop.f32.mrb[4].mxu0 }
  0xe4   :  { %v228_v32 = vmax.f32 %v377_v31, 0.0  ;;  %v164_v33 = vpop.f32.mrb[5].mxu0 }
  0xe5   :  { %v227_v34 = vmax.f32 %v164_v33, 0.0  ;;  %437 = vmatpush3.bf16.msra.mxu1 %v436_v30 }
  0xe6   :  { %438 = vmatprep.subr.bf16.mxu1 %v460_v19 }
  0xe7   :  { %v439_v35 = vpack.c.bf16 %v228_v32, %v227_v34  ;;  %v380_v36 = vpop.f32.mrb[6].mxu0 }
  0xe8   :  { %v230_v37 = vmax.f32 %v380_v36, 0.0  ;;  %v174_v38 = vpop.f32.mrb[7].mxu0 }
  0xe9   :  { %v229_v39 = vmax.f32 %v174_v38, 0.0  ;;  %440 = vmatpush3.bf16.msra.mxu1 %v439_v35 }
  0xea   :  { %441 = vmatprep.subr.bf16.mxu1 %v460_v19 }
  0xeb   :  { %v442_v40 = vpack.c.bf16 %v230_v37, %v229_v39  ;;  %v383_v41 = vpop.f32.mrb[8].mxu0 }
  0xec   :  { %v232_v42 = vmax.f32 %v383_v41, 0.0  ;;  %v184_v43 = vpop.f32.mrb[9].mxu0 }
  0xed   :  { %v231_v44 = vmax.f32 %v184_v43, 0.0  ;;  %443 = vmatpush3.bf16.msra.mxu1 %v442_v40 }
  0xee   :  { %444 = vmatprep.subr.bf16.mxu1 %v460_v19 }
  0xef   :  { %v445_v45 = vpack.c.bf16 %v232_v42, %v231_v44  ;;  %v386_v46 = vpop.f32.mrb[10].mxu0 }
  0xf0   :  { %v234_v47 = vmax.f32 %v386_v46, 0.0  ;;  %v194_v48 = vpop.f32.mrb[11].mxu0 }
  0xf1   :  { %v233_v49 = vmax.f32 %v194_v48, 0.0  ;;  %446 = vmatpush3.bf16.msra.mxu1 %v445_v45 }
  0xf2   :  { %447 = vmatprep.subr.bf16.mxu1 %v460_v19 }
  0xf3   :  { %v448_v50 = vpack.c.bf16 %v234_v47, %v233_v49  ;;  %v389_v51 = vpop.f32.mrb[12].mxu0 }
  0xf4   :  { %v236_v52 = vmax.f32 %v389_v51, 0.0  ;;  %v204_v53 = vpop.f32.mrb[13].mxu0 }
  0xf5   :  { %v235_v54 = vmax.f32 %v204_v53, 0.0  ;;  %449 = vmatpush3.bf16.msra.mxu1 %v448_v50 }
  0xf6   :  { %450 = vmatprep.subr.bf16.mxu1 %v460_v19 }
  0xf7   :  { %v451_v55 = vpack.c.bf16 %v236_v52, %v235_v54  ;;  %v392_v56 = vpop.f32.mrb[14].mxu0 }
  0xf8   :  { %v238_v57 = vmax.f32 %v392_v56, 0.0  ;;  %v214_v58 = vpop.f32.mrb[15].mxu0 }
  0xf9   :  { %v237_v59 = vmax.f32 %v214_v58, 0.0  ;;  %452 = vmatpush3.bf16.msra.mxu1 %v451_v55 }
  0xfa   :  { %453 = vmatprep.subr.bf16.mxu1 %v460_v19 }
  0xfb   :  { %v454_v60 = vpack.c.bf16 %v238_v57, %v237_v59 }
  0xfd   :  { %455 = vmatpush3.bf16.msra.mxu1 %v454_v60 }
 0x100   :  { %426 = vmatmul.mubr.f32.vlgmr.msra.gmra.mrb[0].mxu1 %v463_v61 }
 0x1d3   :  { %v305_v62 = vpop.f32.mrb[0].mxu1 }
 0x1d4   :  { %309 = vst [vmem:[%s554_s2] sm:$0x1] %v305_v62  ;;  %v427_v63 = vpop.f32.mrb[1].mxu1 }

</bundles_post_ra>
